<compile_context>
chip_gen: v6e
topology: v6e:2x2x1
jax: 0.10.0
libtpu: 0.0.40
codegen_flags: <defaults>
</compile_context>

<pallas_src>
import math

import jax
import jax.numpy as jnp
from jax.experimental import pallas as pl
from jax.experimental.pallas import tpu as pltpu


def _bce_neg_sampling_kernel(nw_ref, x_ref, out_ref):
    # x_ref block: (c, TN). Rows 0..K-1 = negatives, row K = positive.
    c = x_ref.shape[0]
    k = c - 1
    # Compute in f32 on every generation (v5e has no bf16 VPU/EUP).
    neg = x_ref[0:k, :].astype(jnp.float32)      # (K, TN)
    pos = x_ref[k:c, :].astype(jnp.float32)      # (1, TN)

    nw = nw_ref[0]                               # SMEM f32 scalar

    # Positive term: softplus(-pos) = -logsigmoid(pos), numerically stable.
    pos_loss = jnp.maximum(-pos, 0.0) + jnp.log1p(jnp.exp(-jnp.abs(pos)))

    # Negative term with the exponential shared between softplus and softmax:
    #   m  = max(max_k neg_k, 0)      (per column, m >= 0)
    #   u  = exp(neg - m)             (<= 1; also the unnormalized softmax weight,
    #                                  the constant shift cancels in s/z)
    #   softplus(neg) = m + log(exp(-m) + u)
    #   weighted_neg  = sum_k u_k * softplus(neg_k) / sum_k u_k
    # -> 2 transcendentals per negative instead of 3 (EUP is the binding slot).
    m = jnp.maximum(jnp.max(neg, axis=0, keepdims=True), 0.0)    # (1, TN)
    u = jnp.exp(neg - m)                                         # (K, TN)
    em = jnp.exp(-m)                                             # (1, TN)
    tiny = jnp.float32(jnp.finfo(jnp.float32).tiny)
    neg_loss = m + jnp.log(jnp.maximum(em + u, tiny))            # (K, TN)

    s = jnp.sum(u * neg_loss, axis=0, keepdims=True)             # (1, TN)
    z = jnp.sum(u, axis=0, keepdims=True)                        # (1, TN)
    weighted_neg = s / z

    loss = (1.0 - nw) * pos_loss + nw * weighted_neg             # (1, TN)
    out_ref[...] = loss.astype(out_ref.dtype)                    # lane-dense store


def bce_with_logits_negative_sampling_loss(logits, negative_weight=0.5, *,
                                           tile_lanes=65536):
    """logits: (..., 1+K); column 0 = positive logit, columns 1..K = negatives.
    Returns the per-example weighted BCE loss of shape (...), in logits.dtype."""
    orig_shape = logits.shape
    c = orig_shape[-1]
    if c < 2:
        raise ValueError("last dim must be 1 positive + >=1 negative (c >= 2)")
    batch_shape = orig_shape[:-1]
    n = math.prod(batch_shape) if batch_shape else 1

    flat = logits.reshape(n, c)
    # Reorder candidates (negatives first, positive last) and flip so the batch
    # dim rides the 128-lane axis.  Slices + concat + transpose fuse into the
    # same copy; no jnp.pad (Pallas masks ragged edge blocks).
    # TODO(synk): if the upstream scoring matmul can emit logits directly in
    # (c, N) layout, this wrapper copy disappears entirely.
    x_t = jnp.concatenate([flat[:, 1:], flat[:, :1]], axis=-1).T   # (c, n)

    itemsize = jnp.dtype(logits.dtype).itemsize

    if n < 128:
        # Tiny inputs: use the full-extent block (always legal, perf-irrelevant).
        tn = n
        grid_n = 1
    else:
        n128 = ((n + 127) // 128) * 128
        # Per-step VMEM: double-buffered (c, tn) input + double-buffered (1, tn)
        # output.  ~12 MiB keeps us inside v5e's 16 MiB scoped-VMEM default and
        # well under v7x's 64 MiB physical VMEM without touching vmem_limit_bytes.
        vmem_budget = 12 * 1024 * 1024
        per_lane_bytes = 2 * (c + 1) * itemsize
        cap = max(128, (vmem_budget // per_lane_bytes) // 128 * 128)
        tn = min(int(tile_lanes), cap, n128)
        # Keep >= ~4 grid blocks when there is enough work so v7x's two
        # TensorCores both get shards and the pipeline has steps to overlap.
        if n128 >= 4 * 128:
            quarter = ((n128 // 4) + 127) // 128 * 128
            tn = min(tn, quarter)
        tn = max(128, (tn // 128) * 128)
        grid_n = (n + tn - 1) // tn

    nw = jnp.asarray([negative_weight], dtype=jnp.float32)

    out = pl.pallas_call(
        _bce_neg_sampling_kernel,
        out_shape=jax.ShapeDtypeStruct((1, n), logits.dtype),
        grid_spec=pltpu.PrefetchScalarGridSpec(
            num_scalar_prefetch=0,
            grid=(grid_n,),
            in_specs=[
                pl.BlockSpec(memory_space=pltpu.MemorySpace.SMEM),   # negative_weight
                pl.BlockSpec((c, tn), lambda i: (0, i)),             # (c, N) logits slab
            ],
            out_specs=pl.BlockSpec((1, tn), lambda i: (0, i)),
        ),
        compiler_params=pltpu.CompilerParams(
            # single embarrassingly-parallel axis: shards across v7x's 2 TCs.
            dimension_semantics=("parallel",),
        ),
    )(nw, x_t)

    return out.reshape(batch_shape) if batch_shape else out.reshape(())


def _reference(logits, negative_weight=0.5):
    x = logits.astype(jnp.float32)
    pos = x[..., 0]
    neg = x[..., 1:]
    pos_loss = -jax.nn.log_sigmoid(pos)
    neg_loss = -jax.nn.log_sigmoid(-neg)
    w = jax.nn.softmax(neg, axis=-1)
    wneg = jnp.sum(w * neg_loss, axis=-1)
    return (1.0 - negative_weight) * pos_loss + negative_weight * wneg


if __name__ == "__main__":
    key = jax.random.PRNGKey(0)
    k1, k2, k3, k4 = jax.random.split(key, 4)

    # small: 2 x 8 examples, each with 1 positive and K=8 negative logits
    logits_small = jax.random.normal(k1, (2, 8, 9), dtype=jnp.float32)
    out_small = jax.block_until_ready(
        bce_with_logits_negative_sampling_loss(logits_small, negative_weight=0.5))
    ref_small = _reference(logits_small, 0.5)
    assert out_small.shape == (2, 8), out_small.shape
    assert jnp.allclose(out_small, ref_small, atol=1e-5, rtol=1e-5)

    # larger: exercises multiple grid steps (4 blocks of 640 lanes)
    logits_big = jax.random.normal(k2, (4, 640, 9), dtype=jnp.float32)
    out_big = jax.block_until_ready(
        bce_with_logits_negative_sampling_loss(logits_big, negative_weight=0.3))
    ref_big = _reference(logits_big, 0.3)
    assert out_big.shape == (4, 640), out_big.shape
    assert jnp.allclose(out_big, ref_big, atol=1e-5, rtol=1e-5)

    # ragged: N = 390 is not a multiple of the 128-lane tile -> masked edge block
    logits_ragged = jax.random.normal(k3, (3, 130, 9), dtype=jnp.float32)
    out_ragged = jax.block_until_ready(
        bce_with_logits_negative_sampling_loss(logits_ragged, negative_weight=0.7))
    ref_ragged = _reference(logits_ragged, 0.7)
    assert out_ragged.shape == (3, 130), out_ragged.shape
    assert jnp.allclose(out_ragged, ref_ragged, atol=1e-5, rtol=1e-5)

    # bf16 input -> bf16 output (math still f32 inside the kernel)
    logits_bf16 = jax.random.normal(k4, (2, 8, 9), dtype=jnp.float32).astype(jnp.bfloat16)
    out_bf16 = jax.block_until_ready(
        bce_with_logits_negative_sampling_loss(logits_bf16, negative_weight=0.5))
    assert out_bf16.dtype == jnp.bfloat16, out_bf16.dtype
    ref_bf16 = _reference(logits_bf16, 0.5)
    assert jnp.allclose(out_bf16.astype(jnp.float32), ref_bf16, atol=0.05, rtol=0.05)

    print("KERNEL_OK")
</pallas_src>

<mosaic_0001>
module attributes {stable_mosaic.version = 11 : i64} {
  func.func @_bce_neg_sampling_kernel(%arg0: i32, %arg1: memref<1xf32, #tpu.memory_space<smem>>, %arg2: memref<9x16xf32, #tpu.memory_space<vmem>>, %arg3: memref<1x16xf32, #tpu.memory_space<vmem>>) attributes {dimension_semantics = [#tpu.dimension_semantics<parallel>], iteration_bounds = array<i64: 1>, scalar_prefetch = 0 : i64, scratch_operands = 0 : i64, tpu.core_type = #tpu.core_type<tc>, window_params = [{transform_indices = @transform_0, window_bounds = array<i64: 1>}, {transform_indices = @transform_1, window_bounds = array<i64: 9, 16>}, {transform_indices = @transform_2, window_bounds = array<i64: 1, 16>}]} {
    %c0 = arith.constant 0 : index
    %c0_0 = arith.constant 0 : index
    %0 = vector.load %arg2[%c0, %c0_0] : memref<9x16xf32, #tpu.memory_space<vmem>>, vector<8x16xf32>
    %c8 = arith.constant 8 : index
    %c0_1 = arith.constant 0 : index
    %1 = vector.load %arg2[%c8, %c0_1] : memref<9x16xf32, #tpu.memory_space<vmem>>, vector<1x16xf32>
    %c0_2 = arith.constant 0 : index
    %2 = memref.load %arg1[%c0_2] : memref<1xf32, #tpu.memory_space<smem>>
    %cst = arith.constant 0.000000e+00 : f32
    %3 = vector.broadcast %cst : f32 to vector<1x16xf32>
    %4 = arith.subf %3, %1 : vector<1x16xf32>
    %cst_3 = arith.constant 0.000000e+00 : f32
    %5 = vector.broadcast %cst_3 : f32 to vector<1x16xf32>
    %6 = arith.maximumf %4, %5 : vector<1x16xf32>
    %7 = math.absf %1 : vector<1x16xf32>
    %cst_4 = arith.constant 0.000000e+00 : f32
    %8 = vector.broadcast %cst_4 : f32 to vector<1x16xf32>
    %9 = arith.subf %8, %7 : vector<1x16xf32>
    %10 = math.exp %9 : vector<1x16xf32>
    %11 = math.log1p %10 : vector<1x16xf32>
    %12 = arith.addf %6, %11 : vector<1x16xf32>
    %cst_5 = arith.constant dense<0xFF800000> : vector<16xf32>
    %13 = vector.multi_reduction <maximumf>, %0, %cst_5 [0] : vector<8x16xf32> to vector<16xf32>
    %14 = vector.shape_cast %13 : vector<16xf32> to vector<1x16xf32>
    %cst_6 = arith.constant 0.000000e+00 : f32
    %15 = vector.broadcast %cst_6 : f32 to vector<1x16xf32>
    %16 = arith.maximumf %14, %15 : vector<1x16xf32>
    %17 = vector.broadcast %16 : vector<1x16xf32> to vector<8x16xf32>
    %18 = arith.subf %0, %17 : vector<8x16xf32>
    %19 = math.exp %18 : vector<8x16xf32>
    %cst_7 = arith.constant 0.000000e+00 : f32
    %20 = vector.broadcast %cst_7 : f32 to vector<1x16xf32>
    %21 = arith.subf %20, %16 : vector<1x16xf32>
    %22 = math.exp %21 : vector<1x16xf32>
    %23 = vector.broadcast %22 : vector<1x16xf32> to vector<8x16xf32>
    %24 = arith.addf %23, %19 : vector<8x16xf32>
    %cst_8 = arith.constant 1.17549435E-38 : f32
    %25 = vector.broadcast %cst_8 : f32 to vector<8x16xf32>
    %26 = arith.maximumf %24, %25 : vector<8x16xf32>
    %27 = math.log %26 : vector<8x16xf32>
    %28 = vector.broadcast %16 : vector<1x16xf32> to vector<8x16xf32>
    %29 = arith.addf %28, %27 : vector<8x16xf32>
    %30 = arith.mulf %19, %29 : vector<8x16xf32>
    %cst_9 = arith.constant dense<0.000000e+00> : vector<16xf32>
    %31 = vector.multi_reduction <add>, %30, %cst_9 [0] : vector<8x16xf32> to vector<16xf32>
    %32 = vector.shape_cast %31 : vector<16xf32> to vector<1x16xf32>
    %cst_10 = arith.constant dense<0.000000e+00> : vector<16xf32>
    %33 = vector.multi_reduction <add>, %19, %cst_10 [0] : vector<8x16xf32> to vector<16xf32>
    %34 = vector.shape_cast %33 : vector<16xf32> to vector<1x16xf32>
    %35 = arith.divf %32, %34 : vector<1x16xf32>
    %cst_11 = arith.constant 1.000000e+00 : f32
    %36 = arith.subf %cst_11, %2 : f32
    %37 = vector.broadcast %36 : f32 to vector<1x16xf32>
    %38 = arith.mulf %37, %12 : vector<1x16xf32>
    %39 = vector.broadcast %2 : f32 to vector<1x16xf32>
    %40 = arith.mulf %39, %35 : vector<1x16xf32>
    %41 = arith.addf %38, %40 : vector<1x16xf32>
    %c0_12 = arith.constant 0 : index
    %c0_13 = arith.constant 0 : index
    %42 = vector.load %arg3[%c0_12, %c0_13] : memref<1x16xf32, #tpu.memory_space<vmem>>, vector<1x16xf32>
    tpu.vector_store %arg3[%c0_12, %c0_13], %41 {strides = array<i32>} : memref<1x16xf32, #tpu.memory_space<vmem>>, vector<1x16xf32>,
    return
  }
  func.func @transform_0(%arg0: i32) -> i32 {
    %c0_i32 = arith.constant 0 : i32
    %c0_i32_0 = arith.constant 0 : i32
    return %c0_i32 : i32
  }
  func.func @transform_1(%arg0: i32) -> (i32, i32) {
    %c0_i32 = arith.constant 0 : i32
    %c0_i32_0 = arith.constant 0 : i32
    return %c0_i32, %arg0 : i32, i32
  }
  func.func @transform_2(%arg0: i32) -> (i32, i32) {
    %c0_i32 = arith.constant 0 : i32
    %c0_i32_0 = arith.constant 0 : i32
    return %c0_i32, %arg0 : i32, i32
  }
}

</mosaic_0001>

<bundles_post_ra>
// kernel: tpu_custom_call.1
= control target key start
LH: loop header
LB: loop body
LE: loop exit
PB: predicated region body
PF: predicated region fallthrough
CT: control target
= control target key end

     0   :  { %8 = vsyncpa [#allocation4], 0  ;;  %s200_s0 = inlined_call_operand.<no memory space> [shape: f32[1], index: 0, kind: input, shape index: {}]   ;;  %s201_s1 = inlined_call_operand.hbm [shape: f32[9,16], index: 1, kind: input, shape index: {}]   ;;  %s202_s2 = inlined_call_operand.hbm [shape: f32[1,16], index: 2, kind: output, shape index: {}]  }
   0x1   :  { %9 = vsyncpa [#allocation5], 0  ;;  %s166_s9 = smov [#allocation3]  }
   0x2   :  { %s17_s10 = sshll.u32 %s166_s9, 4  ;;  %s18_s10 = int_to_ptr.vmem [resolvable:$true] %s17_s10 }
   0x3   :  { %s130_s11 = scalar_lea.vmem %s18_s10, 256  ;;  %p135_p1 = scmp.lt.s32.totalorder %s18_s10, %s18_s10 }
   0x4   :  { %p131_p0 = scmp.ne.s32.totalorder %s18_s10, %s130_s11  ;;  %p136_p2 = scmp.lt.s32.totalorder %s130_s11, %s130_s11 }
   0x6   :  { %p137_p3 = por %p136_p2, %p135_p1 }
   0x8   :  { %p138_p4 = pnand %p137_p3, %p131_p0 }
   0xa   :  { %141 = shalt.err (!%p138_p4)
}
   0xb   :  { %s167_s12 = smov 128   ;;  %s168_s13 = smov 8  }
   0xc   :  { %23 = dma.hbm_to_vmem [thread:$0]  %s201_s1, 256, %s18_s10, [#allocation4], %s167_s12, %s167_s12, %s168_s13  }
   0xd   :  { %162 = dma.done.wait [#allocation4], 256  }
   0xe   :  { %163 = vsyncadd [#allocation4], 4294967040  ;;  %vm46_vm0 = vcmask 130048   ;;  %v27_v0 = vld [vmem:[#allocation3] sm:$0xff]  ;;  %v28_v6 = vld [vmem:[#allocation3 + $0x8] sm:$0x1]  ;;  %v86_v53 = vstv %s200_s0 }
   0xf   :  { %v47_v1 = vsel %vm46_vm0, %v27_v0, -inf  ;;  %v32_v9 = vand.u32 2147483647, %v28_v6  ;;  %v30_v39 = vsub.f32 0.0, %v28_v6  ;;  %s83_s17 = ssub.f32 1.0, %s200_s0  ;;  %s169_s20 = smov [#allocation6]  }
  0x10   :  { %v48_v2 = vrot.slane %v47_v1, 4  ;;  %s97_s21 = sshll.u32 %s169_s20, 4  ;;  %vm89_vm2 = vcmask 122880   ;;  %s98_s21 = int_to_ptr.vmem [resolvable:$true] %s97_s21 }
  0x11   :  { %v33_v13 = vsub.f32 0.0, %v32_v9  ;;  %v31_v44 = vmax.f32 %v30_v39, 0.0  ;;  %v84_v51 = vstv %s83_s17  ;;  %s142_s22 = scalar_lea.vmem %s98_s21, 16  ;;  %s146_s23 = scalar_lea.vmem %s98_s21, 32 }
  0x12   :  { %v49_v3 = vmax.f32 %v47_v1, %v48_v2  ;;  %p143_p5 = scmp.ne.s32.totalorder %s98_s21, %s142_s22  ;;  %p147_p6 = scmp.lt.s32.totalorder %s98_s21, %s98_s21 }
  0x13   :  { %v34_v16 = vmul.f32 1.442695, %v33_v13  ;;  %p148_p7 = scmp.lt.s32.totalorder %s146_s23, %s142_s22 }
  0x14   :  { %v50_v4 = vrot.slane %v49_v3, 2 }
  0x15   :  { %p149_p8 = por %p148_p7, %p147_p6 }
  0x16   :  { %v51_v5 = vmax.f32 %v49_v3, %v50_v4 }
  0x17   :  { %p150_p9 = pnand %p149_p8, %p143_p5 }
  0x18   :  { %v52_v7 = vrot.slane %v51_v5, 1 }
  0x1a   :  { %v53_v8 = vmax.f32 %v51_v5, %v52_v7 }
  0x1c   :  { %v54_v10 = vmax.f32 %v53_v8, 0.0 }
  0x1e   :  { %v55_v11 = vsub.f32 %v27_v0, %v54_v10  ;;  %v58_v12 = vsub.f32 0.0, %v54_v10 }
  0x20   :  { %v56_v14 = vmul.f32 1.442695, %v55_v11  ;;  %v59_v15 = vmul.f32 1.442695, %v58_v12 }
  0x22   :  { %110 = vpow2.f32 %v56_v14 }
  0x23   :  { %112 = vpow2.f32 %v59_v15 }
  0x24   :  { %114 = vpow2.f32 %v34_v16 }
  0x2f   :  { %v111_v17 = vpop.eup %110 }
  0x30   :  { %v113_v18 = vpop.eup %112  ;;  %v74_v19 = vsel %vm46_vm0, %v111_v17, 0.0 }
  0x31   :  { %v61_v20 = vadd.f32 %v113_v18, %v111_v17  ;;  %v75_v21 = vrot.slane %v74_v19, 4  ;;  %v115_v24 = vpop.eup %114 }
  0x32   :  { %v36_v26 = vadd.f32 1.0, %v115_v24  ;;  %v39_v31 = vmul.f32 -0.5, %v115_v24  ;;  %v42_v37 = vand.u32 2147483647, %v115_v24 }
  0x33   :  { %v62_v22 = vmax.f32 %v61_v20, 1.1754944e-38  ;;  %v76_v23 = vadd.f32 %v75_v21, %v74_v19 }
  0x34   :  { %v40_v34 = vadd.f32 1.0, %v39_v31  ;;  %vm43_vm1 = vcmp.lt.f32.partialorder %v42_v37, 0.0004427343 }
  0x35   :  { %116 = vlog2.f32 %v62_v22  ;;  %v77_v25 = vrot.slane %v76_v23, 2 }
  0x36   :  { %118 = vlog2.f32 %v36_v26  ;;  %v41_v42 = vmul.f32 %v115_v24, %v40_v34 }
  0x37   :  { %v78_v27 = vadd.f32 %v77_v25, %v76_v23 }
  0x39   :  { %v79_v28 = vrot.slane %v78_v27, 1 }
  0x3b   :  { %v80_v30 = vadd.f32 %v79_v28, %v78_v27 }
  0x3d   :  { %120 = vrcp.f32 %v80_v30 }
  0x42   :  { %v117_v29 = vpop.eup %116 }
  0x43   :  { %v64_v32 = vmul.f32 0.6931472, %v117_v29  ;;  %v119_v36 = vpop.eup %118 }
  0x44   :  { %v38_v41 = vmul.f32 0.6931472, %v119_v36 }
  0x45   :  { %v65_v33 = vadd.f32 %v64_v32, %v54_v10 }
  0x46   :  { %v44_v46 = vsel %vm43_vm1, %v41_v42, %v38_v41 }
  0x47   :  { %v66_v35 = vmul.f32 %v111_v17, %v65_v33  ;;  %v45_v48 = vadd.f32 %v44_v46, %v31_v44 }
  0x49   :  { %v67_v38 = vsel %vm46_vm0, %v66_v35, 0.0  ;;  %v85_v55 = vmul.f32 %v84_v51, %v45_v48 }
  0x4a   :  { %v68_v40 = vrot.slane %v67_v38, 4  ;;  %v121_v50 = vpop.eup %120 }
  0x4c   :  { %v69_v43 = vadd.f32 %v68_v40, %v67_v38 }
  0x4e   :  { %v70_v45 = vrot.slane %v69_v43, 2 }
  0x50   :  { %v71_v47 = vadd.f32 %v70_v45, %v69_v43 }
  0x52   :  { %v72_v49 = vrot.slane %v71_v47, 1 }
  0x54   :  { %v73_v52 = vadd.f32 %v72_v49, %v71_v47 }
  0x56   :  { %v82_v54 = vmul.f32 %v121_v50, %v73_v52 }
  0x58   :  { %v87_v56 = vmul.f32 %v86_v53, %v82_v54 }
  0x5a   :  { %v88_v57 = vadd.f32 %v87_v56, %v85_v55 }
  0x5c   :  { %90 = vst.msk [vmem:[#allocation6] sm:$0x1] %vm89_vm2, %v88_v57 }
  0x5d   :  { %153 = shalt.err (!%p150_p9)
}
  0x5e   :  { %100 = dma.vmem_to_hbm [thread:$0]  %s98_s21, 16, %s202_s2, [#allocation5]  }
  0x5f   :  { %164 = dma.done.wait [#allocation5], 16  }
  0x60   :  { %165 = vsyncadd [#allocation5], 4294967280 }
  0x61   :  { %104 = vsyncpa [#allocation4], 1 }
  0x62   :  { %105 = vsyncpa [#allocation5], 1 }

</bundles_post_ra>
